<compile_context>
chip_gen: v6e
topology: v6e:2x2x1
jax: 0.10.0
libtpu: 0.0.40
codegen_flags: <defaults>
</compile_context>

<pallas_src>
import jax
import jax.numpy as jnp
from jax.experimental import pallas as pl
from jax.experimental.pallas import tpu as pltpu


def _round_up(x, m):
    return -(-x // m) * m


def pack_set_encoder_params(w1, b1, w2, b2, set_size):
    """One-time packing of SetEncoder parameters into a single VMEM slab.

    Layout (H = h_dim lanes wide; each piece starts on an 8-row sublane tile):
      rows [0, C)        : W1 (zero-padded to H columns, column H-1 = 0)
      row  C             : b1 (lane H-1 = 0)
      rows [r2, r2 + H)  : W2 / S (zero-padded row/column)
      row  r2 + H        : b2, with lane H-1 = float(S)
    Call this once when weights are created/updated (NOT per forward).
    """
    C, Hm1 = w1.shape
    H = Hm1 + 1
    r2 = _round_up(C + 1, 8)
    rb2 = r2 + H
    P = _round_up(rb2 + 1, 8)
    slab = jnp.zeros((P, H), jnp.float32)
    slab = slab.at[0:C, 0:Hm1].set(w1.astype(jnp.float32))
    slab = slab.at[C, 0:Hm1].set(b1.astype(jnp.float32))
    slab = slab.at[r2:r2 + Hm1, 0:Hm1].set(w2.astype(jnp.float32) / float(set_size))
    slab = slab.at[rb2, 0:Hm1].set(b2.astype(jnp.float32))
    slab = slab.at[rb2, Hm1].set(float(set_size))
    return slab


def set_encoder_kernel(x_ref, p_ref, o_ref):
    R, C = x_ref.shape          # R = TB * S flattened context rows
    TB, H = o_ref.shape
    S = R // TB
    r2 = _round_up(C + 1, 8)

    # Static slices into the packed parameter slab (cheap; no extra DMAs).
    w1 = p_ref[0:C, :]                       # (C, H)  column H-1 is zero
    b1 = p_ref[C:C + 1, :]                   # (1, H)  lane H-1 is zero
    w2 = p_ref[r2:r2 + H, :]                 # (H, H)  already scaled by 1/S
    b2 = p_ref[r2 + H:r2 + H + 1, :]         # (1, H)  lane H-1 = float(S)

    x = x_ref[...]                           # (R, C)

    # ---- Layer 1: Linear(C -> Hm1) + ReLU (padded lane H-1 stays 0) --------
    if R >= 256:
        # Enough rows that a K=C MXU pass is worthwhile (MXU is idle anyway).
        h = jnp.dot(x, w1, preferred_element_type=jnp.float32) + b1
    else:
        # Tiny row count: C broadcast FMAs on the VPU, bias folded into init.
        h = b1 + x[:, 0:1] * w1[0:1, :]
        for k in range(1, C):                # statically unrolled
            h = h + x[:, k:k + 1] * w1[k:k + 1, :]
    h = jnp.maximum(h, 0.0)                  # (R, H)

    # ---- Per-set sum (mean's 1/S is folded into w2), no pool matrix --------
    h_sum = jnp.sum(h.reshape(TB, S, H), axis=1)         # (TB, H)

    # ---- Layer 2 + context-size feature in one lane-dense store ------------
    o_ref[...] = jnp.dot(h_sum, w2, preferred_element_type=jnp.float32) + b2


def set_encoder_forward(context, packed_params, *, batch_tile=None):
    """context: (B, S, C) f32; packed_params from pack_set_encoder_params
    (built with the same S). Returns (B, h_dim) f32."""
    B, S, C = context.shape
    P, H = packed_params.shape

    if batch_tile is None:
        # Small B: one block (extra grid steps are pure pipeline overhead).
        # Large B: >= 2 sublane-aligned blocks so both v7x TensorCores work.
        batch_tile = B // 2 if (B >= 16 and B % 16 == 0) else B
    TB = batch_tile
    assert B % TB == 0, "batch_tile must divide the batch"
    assert TB == B or TB % 8 == 0, "sub-batch tiles must be a multiple of 8"
    R = TB * S
    num_blocks = B // TB

    x2d = context.reshape(B * S, C)          # metadata-only reshape

    return pl.pallas_call(
        set_encoder_kernel,
        out_shape=jax.ShapeDtypeStruct((B, H), jnp.float32),
        grid_spec=pltpu.PrefetchScalarGridSpec(
            num_scalar_prefetch=0,
            grid=(num_blocks,),                              # == 1 at small B
            in_specs=[
                pl.BlockSpec((R, C), lambda i: (i, 0)),      # context row-slab
                pl.BlockSpec((P, H), lambda i: (0, 0)),      # packed params
            ],
            out_specs=pl.BlockSpec((TB, H), lambda i: (i, 0)),
        ),
        compiler_params=pltpu.CompilerParams(
            dimension_semantics=("parallel",)),              # v7x TC sharding
    )(x2d, packed_params)


# TODO(synk): is_attentive=True branch (nn.MultiheadAttention) not implemented;
# this script covers the MLP + mean-aggregation path only.


if __name__ == "__main__":
    # Module hyperparameters
    c_dim, h_dim, num_layers = 4, 32, 2
    B, S = 2, 8
    Hm1 = h_dim - 1

    key = jax.random.PRNGKey(0)
    k_ctx, k_w1, k_b1, k_w2, k_b2 = jax.random.split(key, 5)

    # Deterministic PyTorch-style uniform(-1/sqrt(fan_in), 1/sqrt(fan_in)) init
    bound1 = 1.0 / jnp.sqrt(jnp.float32(c_dim))
    bound2 = 1.0 / jnp.sqrt(jnp.float32(Hm1))
    w1 = jax.random.uniform(k_w1, (c_dim, Hm1), jnp.float32, -bound1, bound1)
    b1 = jax.random.uniform(k_b1, (Hm1,), jnp.float32, -bound1, bound1)
    w2 = jax.random.uniform(k_w2, (Hm1, Hm1), jnp.float32, -bound2, bound2)
    b2 = jax.random.uniform(k_b2, (Hm1,), jnp.float32, -bound2, bound2)

    context = jax.random.normal(k_ctx, (B, S, c_dim), jnp.float32)

    # One-time parameter packing (hoisted out of the per-forward path).
    params = pack_set_encoder_params(w1, b1, w2, b2, set_size=S)

    out = jax.block_until_ready(set_encoder_forward(context, params))

    # Reference in plain JAX (same math as the PyTorch forward)
    ref = jnp.maximum(context @ w1 + b1, 0.0) @ w2 + b2
    ref = jnp.mean(ref, axis=1)
    ref = jnp.concatenate([ref, jnp.full((B, 1), float(S), jnp.float32)], axis=1)

    assert out.shape == (B, h_dim), out.shape
    assert jnp.allclose(out, ref, atol=1e-5, rtol=1e-5), "mismatch vs reference"

    print("KERNEL_OK")
</pallas_src>

<mosaic_0001>
module attributes {stable_mosaic.version = 11 : i64} {
  func.func @set_encoder_kernel(%arg0: i32, %arg1: memref<16x4xf32, #tpu.memory_space<vmem>>, %arg2: memref<48x32xf32, #tpu.memory_space<vmem>>, %arg3: memref<2x32xf32, #tpu.memory_space<vmem>>) attributes {dimension_semantics = [#tpu.dimension_semantics<parallel>], iteration_bounds = array<i64: 1>, scalar_prefetch = 0 : i64, scratch_operands = 0 : i64, tpu.core_type = #tpu.core_type<tc>, window_params = [{transform_indices = @transform_0, window_bounds = array<i64: 16, 4>}, {pipeline_mode = #tpu.pipeline_mode<synchronous>, transform_indices = @transform_1, window_bounds = array<i64: 48, 32>}, {transform_indices = @transform_2, window_bounds = array<i64: 2, 32>}]} {
    %c0 = arith.constant 0 : index
    %c0_0 = arith.constant 0 : index
    %0 = vector.load %arg2[%c0, %c0_0] : memref<48x32xf32, #tpu.memory_space<vmem>>, vector<4x32xf32>
    %c4 = arith.constant 4 : index
    %c0_1 = arith.constant 0 : index
    %1 = vector.load %arg2[%c4, %c0_1] : memref<48x32xf32, #tpu.memory_space<vmem>>, vector<1x32xf32>
    %c8 = arith.constant 8 : index
    %c0_2 = arith.constant 0 : index
    %2 = vector.load %arg2[%c8, %c0_2] : memref<48x32xf32, #tpu.memory_space<vmem>>, vector<32x32xf32>
    %c40 = arith.constant 40 : index
    %c0_3 = arith.constant 0 : index
    %3 = vector.load %arg2[%c40, %c0_3] : memref<48x32xf32, #tpu.memory_space<vmem>>, vector<1x32xf32>
    %c0_4 = arith.constant 0 : index
    %c0_5 = arith.constant 0 : index
    %4 = vector.load %arg1[%c0_4, %c0_5] : memref<16x4xf32, #tpu.memory_space<vmem>>, vector<16x4xf32>
    %5 = vector.extract_strided_slice %4 {offsets = [0, 0], sizes = [16, 1], strides = [1, 1]} : vector<16x4xf32> to vector<16x1xf32>
    %6 = vector.extract_strided_slice %0 {offsets = [0, 0], sizes = [1, 32], strides = [1, 1]} : vector<4x32xf32> to vector<1x32xf32>
    %7 = vector.broadcast %5 : vector<16x1xf32> to vector<16x32xf32>
    %8 = vector.broadcast %6 : vector<1x32xf32> to vector<16x32xf32>
    %9 = arith.mulf %7, %8 : vector<16x32xf32>
    %10 = vector.broadcast %1 : vector<1x32xf32> to vector<16x32xf32>
    %11 = arith.addf %10, %9 : vector<16x32xf32>
    %12 = vector.extract_strided_slice %4 {offsets = [0, 1], sizes = [16, 1], strides = [1, 1]} : vector<16x4xf32> to vector<16x1xf32>
    %13 = vector.extract_strided_slice %0 {offsets = [1, 0], sizes = [1, 32], strides = [1, 1]} : vector<4x32xf32> to vector<1x32xf32>
    %14 = vector.broadcast %12 : vector<16x1xf32> to vector<16x32xf32>
    %15 = vector.broadcast %13 : vector<1x32xf32> to vector<16x32xf32>
    %16 = arith.mulf %14, %15 : vector<16x32xf32>
    %17 = arith.addf %11, %16 : vector<16x32xf32>
    %18 = vector.extract_strided_slice %4 {offsets = [0, 2], sizes = [16, 1], strides = [1, 1]} : vector<16x4xf32> to vector<16x1xf32>
    %19 = vector.extract_strided_slice %0 {offsets = [2, 0], sizes = [1, 32], strides = [1, 1]} : vector<4x32xf32> to vector<1x32xf32>
    %20 = vector.broadcast %18 : vector<16x1xf32> to vector<16x32xf32>
    %21 = vector.broadcast %19 : vector<1x32xf32> to vector<16x32xf32>
    %22 = arith.mulf %20, %21 : vector<16x32xf32>
    %23 = arith.addf %17, %22 : vector<16x32xf32>
    %24 = vector.extract_strided_slice %4 {offsets = [0, 3], sizes = [16, 1], strides = [1, 1]} : vector<16x4xf32> to vector<16x1xf32>
    %25 = vector.extract_strided_slice %0 {offsets = [3, 0], sizes = [1, 32], strides = [1, 1]} : vector<4x32xf32> to vector<1x32xf32>
    %26 = vector.broadcast %24 : vector<16x1xf32> to vector<16x32xf32>
    %27 = vector.broadcast %25 : vector<1x32xf32> to vector<16x32xf32>
    %28 = arith.mulf %26, %27 : vector<16x32xf32>
    %29 = arith.addf %23, %28 : vector<16x32xf32>
    %cst = arith.constant 0.000000e+00 : f32
    %30 = vector.broadcast %cst : f32 to vector<16x32xf32>
    %31 = arith.maximumf %29, %30 : vector<16x32xf32>
    %32 = vector.shape_cast %31 : vector<16x32xf32> to vector<2x8x32xf32>
    %cst_6 = arith.constant dense<0.000000e+00> : vector<2x32xf32>
    %33 = vector.multi_reduction <add>, %32, %cst_6 [1] : vector<2x8x32xf32> to vector<2x32xf32>
    %cst_7 = arith.constant dense<0.000000e+00> : vector<2x32xf32>
    %34 = tpu.matmul %33, %2, %cst_7 {dimension_numbers = #tpu.dot_dimension_numbers<[1], [0], [0], [1], [0, 0, 1, 1], [], []>} : vector<2x32xf32>, vector<32x32xf32>, vector<2x32xf32> -> vector<2x32xf32>
    %35 = vector.broadcast %3 : vector<1x32xf32> to vector<2x32xf32>
    %36 = arith.addf %34, %35 : vector<2x32xf32>
    %c0_8 = arith.constant 0 : index
    %c0_9 = arith.constant 0 : index
    %37 = vector.load %arg3[%c0_8, %c0_9] : memref<2x32xf32, #tpu.memory_space<vmem>>, vector<2x32xf32>
    tpu.vector_store %arg3[%c0_8, %c0_9], %36 {strides = array<i32>} : memref<2x32xf32, #tpu.memory_space<vmem>>, vector<2x32xf32>,
    return
  }
  func.func @transform_0(%arg0: i32) -> (i32, i32) {
    %c0_i32 = arith.constant 0 : i32
    %c0_i32_0 = arith.constant 0 : i32
    return %arg0, %c0_i32 : i32, i32
  }
  func.func @transform_1(%arg0: i32) -> (i32, i32) {
    %c0_i32 = arith.constant 0 : i32
    %c0_i32_0 = arith.constant 0 : i32
    %c0_i32_1 = arith.constant 0 : i32
    return %c0_i32, %c0_i32_0 : i32, i32
  }
  func.func @transform_2(%arg0: i32) -> (i32, i32) {
    %c0_i32 = arith.constant 0 : i32
    %c0_i32_0 = arith.constant 0 : i32
    return %arg0, %c0_i32 : i32, i32
  }
}

</mosaic_0001>

<bundles_post_ra>
// kernel: tpu_custom_call.1
= control target key start
LH: loop header
LB: loop body
LE: loop exit
PB: predicated region body
PF: predicated region fallthrough
CT: control target
= control target key end

     0   :  { %v258_v1 = vmov 1   ;;  %v259_v2 = vmov 0   ;;  %s313_s0 = inlined_call_operand.vmem [shape: f32[16,4], index: 0, kind: input, shape index: {}]   ;;  %s314_s1 = inlined_call_operand.vmem [shape: f32[48,32], index: 1, kind: input, shape index: {}]   ;;  %s315_s2 = inlined_call_operand.hbm [shape: f32[2,32], index: 2, kind: output, shape index: {}]  }
   0x1   :  { %v19_v0 = vld [vmem:[%s313_s0] sm:$0xff]  ;;  %231 = vset.pattern.permute.xlu1 %v258_v1  ;;  %230 = vset.pattern.permute.xlu0 %v259_v2 }
   0x2   :  { %7 = vsyncpa [#allocation3], 0  ;;  %44 = vperm.xlu1 %231, %v19_v0   ;;  %23 = vperm.xlu0 %230, %v19_v0   ;;  %v20_v3 = vld [vmem:[%s313_s0 + $0x8] sm:$0xff]  ;;  %v260_v4 = vmov 2   ;;  %v261_v5 = vmov 3   ;;  %v17_v6 = vld [vmem:[%s314_s1 + $0x20] sm:$0xff]  ;;  %v31_v11 = vlaneseq }
   0x3   :  { %v262_v7 = vmov 0.0   ;;  %v16_v8 = vld [vmem:[%s314_s1 + $0x18] sm:$0xff]  ;;  %vm263_vm0 = vmmov 0   ;;  %v15_v9 = vld [vmem:[%s314_s1 + $0x10] sm:$0xff]  ;;  %v14_v10 = vld [vmem:[%s314_s1 + $0x8] sm:$0xff]  ;;  %vm93_vm1 = vcmask 261120  }
   0x4   :  { %212 = vmatprep.subr.mxu0 %v262_v7  ;;  %220 = vmatprep.mubr.msk.f32.mxu0 %vm263_vm0, %v262_v7  ;;  %v32_v12 = vshrl.u32 %v31_v11, 7  ;;  %v12_v14 = vld [vmem:[%s314_s1] sm:$0xf]  ;;  %v204_v24 = vld [vmem:[%s314_s1 + $0x4] ss:$0 sm:$0xff]  ;;  %vm114_vm2 = vcmask 1041409  }
   0x5   :  { %213 = vmatpush3.msra.mxu0 %v17_v6  ;;  %s264_s26 = smov [#allocation2]   ;;  %vm188_vm3 = vcmask 254976  }
   0x6   :  { %48 = vperm.xlu1 %231, %v20_v3   ;;  %28 = vperm.xlu0 %230, %v20_v3   ;;  %v33_v13 = vsub.s32 0, %v32_v12  ;;  %v53_v18 = vsub.s32 1, %v32_v12  ;;  %v69_v19 = vsub.s32 2, %v32_v12  ;;  %v85_v25 = vsub.s32 3, %v32_v12  ;;  %s196_s27 = sshll.u32 %s264_s26, 4  ;;  %s197_s27 = int_to_ptr.vmem [resolvable:$true] %s196_s27 }
   0x7   :  { %214 = vmatprep.subr.mxu0 %v262_v7  ;;  %s236_s28 = scalar_lea.vmem %s197_s27, 32  ;;  %p241_p1 = scmp.lt.s32.totalorder %s197_s27, %s197_s27 }
   0x8   :  { %215 = vmatpush3.msra.mxu0 %v16_v8  ;;  %v34_v17 = vrot.slane %v12_v14, %v33_v13  ;;  %v54_v26 = vrot.slane %v12_v14, %v53_v18  ;;  %v70_v28 = vrot.slane %v12_v14, %v69_v19  ;;  %v86_v33 = vrot.slane %v12_v14, %v85_v25  ;;  %p237_p0 = scmp.ne.s32.totalorder %s197_s27, %s236_s28  ;;  %p242_p2 = scmp.lt.s32.totalorder %s236_s28, %s236_s28 }
   0x9   :  { %216 = vmatprep.subr.mxu0 %v262_v7 }
   0xa   :  { %233 = vset.pattern.permute.xlu1 %v260_v4  ;;  %232 = vset.pattern.permute.xlu0 %v260_v4  ;;  %p243_p3 = por %p242_p2, %p241_p1 }
   0xb   :  { %64 = vperm.xlu1 %233, %v20_v3   ;;  %60 = vperm.xlu0 %232, %v19_v0  }
   0xc   :  { %217 = vmatpush3.msra.mxu0 %v15_v9  ;;  %p244_p4 = pnand %p243_p3, %p237_p0 }
   0xd   :  { %218 = vmatprep.subr.mxu0 %v262_v7 }
   0xe   :  { %219 = vmatpush3.msra.mxu0 %v14_v10 }
   0xf   :  { %234 = vset.pattern.permute.xlu1 %v261_v5  ;;  %235 = vset.pattern.permute.xlu0 %v261_v5 }
  0x10   :  { %76 = vperm.xlu1 %234, %v19_v0   ;;  %80 = vperm.xlu0 %235, %v20_v3   ;;  %v205_v0 = vld [vmem:[%s314_s1 + $0x28] ss:$0 sm:$0xff] }
  0x7d   :  { %v45_v15 = vpop.permute.xlu1 %44  ;;  %v24_v16 = vpop.permute.xlu0 %23 }
  0x7e   :  { %v35_v22 = vmul.f32 %v34_v17, %v24_v16  ;;  %v55_v34 = vmul.f32 %v54_v26, %v45_v15 }
  0x80   :  { %v41_v29 = vadd.f32 %v204_v24, %v35_v22 }
  0x81   :  { %v49_v20 = vpop.permute.xlu1 %48  ;;  %v29_v21 = vpop.permute.xlu0 %28 }
  0x82   :  { %v36_v23 = vmul.f32 %v34_v17, %v29_v21  ;;  %v56_v30 = vmul.f32 %v54_v26, %v49_v20  ;;  %v57_v38 = vadd.f32 %v55_v34, %v41_v29 }
  0x84   :  { %v42_v27 = vadd.f32 %v204_v24, %v36_v23 }
  0x86   :  { %v65_v31 = vpop.permute.xlu1 %64  ;;  %v61_v32 = vpop.permute.xlu0 %60  ;;  %v58_v35 = vadd.f32 %v56_v30, %v42_v27 }
  0x87   :  { %v72_v36 = vmul.f32 %v70_v28, %v65_v31  ;;  %v71_v37 = vmul.f32 %v70_v28, %v61_v32 }
  0x89   :  { %v74_v41 = vadd.f32 %v72_v36, %v58_v35  ;;  %v73_v42 = vadd.f32 %v71_v37, %v57_v38 }
  0x8b   :  { %v77_v39 = vpop.permute.xlu1 %76  ;;  %v81_v40 = vpop.permute.xlu0 %80 }
  0x8c   :  { %v87_v43 = vmul.f32 %v86_v33, %v77_v39  ;;  %v88_v44 = vmul.f32 %v86_v33, %v81_v40 }
  0x8e   :  { %v89_v45 = vadd.f32 %v87_v43, %v73_v42  ;;  %v90_v46 = vadd.f32 %v88_v44, %v74_v41 }
  0x90   :  { %v91_v47 = vmax.f32 %v89_v45, 0.0  ;;  %v92_v48 = vmax.f32 %v90_v46, 0.0 }
  0x92   :  { %v94_v49 = vsel %vm93_vm1, %v91_v47, 0.0  ;;  %v101_v50 = vsel %vm93_vm1, %v92_v48, 0.0 }
  0x93   :  { %v95_v51 = vrot.slane %v94_v49, 4  ;;  %v102_v52 = vrot.slane %v101_v50, 4 }
  0x95   :  { %v96_v53 = vadd.f32 %v95_v51, %v94_v49  ;;  %v103_v54 = vadd.f32 %v102_v52, %v101_v50 }
  0x97   :  { %v97_v55 = vrot.slane %v96_v53, 2  ;;  %v104_v56 = vrot.slane %v103_v54, 2 }
  0x99   :  { %v98_v57 = vadd.f32 %v97_v55, %v96_v53  ;;  %v105_v58 = vadd.f32 %v104_v56, %v103_v54 }
  0x9b   :  { %v99_v59 = vrot.slane %v98_v57, 1  ;;  %v106_v60 = vrot.slane %v105_v58, 1 }
  0x9d   :  { %v100_v61 = vadd.f32 %v99_v59, %v98_v57  ;;  %v107_v62 = vadd.f32 %v106_v60, %v105_v58 }
  0x9f   :  { %v115_v63 = vsel %vm114_vm2, %v107_v62, %v100_v61 }
  0xa0   :  { %221 = vmatmul.mubr.msk.f32.vlgmr.msra.gmra.mxu0 %vm93_vm1, %v115_v63 }
 0x160   :  { %v184_v1 = vpop.f32.mrf.mxu0 }
 0x161   :  { %v185_v2 = vadd.f32 %v205_v0, %v184_v1 }
 0x162   :  { %v222_v3 = vpop.f32.mrf.mxu0 }
 0x163   :  { %189 = vst.msk [vmem:[#allocation2] sm:$0x3] %vm188_vm3, %v185_v2 }
 0x164   :  { %247 = shalt.err (!%p244_p4)
}
 0x165   :  { %199 = dma.vmem_to_hbm [thread:$0]  %s197_s27, 32, %s315_s2, [#allocation3]  }
 0x166   :  { %256 = dma.done.wait [#allocation3], 32  }
 0x167   :  { %257 = vsyncadd [#allocation3], 4294967264 }
 0x168   :  { %203 = vsyncpa [#allocation3], 1 }

</bundles_post_ra>
